<compile_context>
chip_gen: v6e
topology: v6e:2x2x1
jax: 0.10.0
libtpu: 0.0.40
codegen_flags: <defaults>
</compile_context>

<pallas_src>
import jax
import jax.numpy as jnp
from jax.experimental import pallas as pl
from jax.experimental.pallas import tpu as pltpu

STATE_DIM = 128
HIDDEN = 128
ACTION_DIM = 4
OUT_PAD = 128            # fc4 is padded to 128 lanes for a clean MXU / VPU path
NEG_SLOPE = 0.1          # Python float: inlined, not a captured jnp constant
NEG_BIG = -1e30          # Python float: used only in host-side bias padding


def _round_up(n, m):
    return ((n + m - 1) // m) * m


def _lrelu(v):
    return jnp.where(v > 0, v, NEG_SLOPE * v)


def policy_kernel(x_ref,
                  w1_ref, b1_ref,
                  w2_ref, b2_ref,
                  w3_ref, b3_ref,
                  w4_ref, b4_ref,
                  out_ref):
    # x arrives f32; cast to bf16 on the VPU (huge slack) for the MXU path.
    x = x_ref[...].astype(jnp.bfloat16)

    h = _lrelu(jnp.dot(x, w1_ref[...], preferred_element_type=jnp.float32)
               + b1_ref[...])
    h = _lrelu(jnp.dot(h.astype(jnp.bfloat16), w2_ref[...],
                       preferred_element_type=jnp.float32) + b2_ref[...])
    h = _lrelu(jnp.dot(h.astype(jnp.bfloat16), w3_ref[...],
                       preferred_element_type=jnp.float32) + b3_ref[...])
    # fc4 is zero-padded to 128 output lanes; its bias carries -1e30 on the
    # pad lanes, so they vanish (exp -> 0) in the softmax with no masking ops.
    logits = (jnp.dot(h.astype(jnp.bfloat16), w4_ref[...],
                      preferred_element_type=jnp.float32) + b4_ref[...])

    m = jnp.max(logits, axis=-1, keepdims=True)
    e = jnp.exp(logits - m)
    denom = jnp.sum(e, axis=-1, keepdims=True)
    probs = e / denom                       # exact normalization (cheap here)

    out_ref[...] = probs[:, :ACTION_DIM].astype(out_ref.dtype)


def prepare_params(params):
    """One-time conversion of f32 torch-style params to kernel-ready params.

    Call once after init / each optimizer step, not per forward call.
    """
    w1, b1, w2, b2, w3, b3, w4, b4 = params
    w4p = jnp.pad(w4, ((0, 0), (0, OUT_PAD - ACTION_DIM)))                 # zero cols
    b4p = jnp.pad(b4, ((0, 0), (0, OUT_PAD - ACTION_DIM)),
                  constant_values=NEG_BIG)                                  # mask in bias
    return (w1.astype(jnp.bfloat16), b1,
            w2.astype(jnp.bfloat16), b2,
            w3.astype(jnp.bfloat16), b3,
            w4p.astype(jnp.bfloat16), b4p)


def policy_forward(x, prepared_params):
    """x: (B, STATE_DIM) float32. Returns (B, ACTION_DIM) softmax probabilities."""
    B = x.shape[0]
    w1b, b1, w2b, b2, w3b, b3, w4b, b4p = prepared_params

    # Large batch tile (per-grid-step overhead dominates at these sizes), rounded
    # to a multiple of 16 (bf16 (16,128) native tile). Cap at ceil(B/2) so the
    # parallel grid has >=2 steps when possible (uses both TCs on v7x).
    TB = min(1024, _round_up(max(1, (B + 1) // 2), 16))
    B_pad = _round_up(B, TB)
    if B_pad != B:
        x = jnp.pad(x, ((0, B_pad - B), (0, 0)))

    x_spec = pl.BlockSpec((TB, STATE_DIM), lambda i: (i, 0))
    out_spec = pl.BlockSpec((TB, ACTION_DIM), lambda i: (i, 0))
    const = lambda shape: pl.BlockSpec(shape, lambda i: (0, 0))

    out = pl.pallas_call(
        policy_kernel,
        out_shape=jax.ShapeDtypeStruct((B_pad, ACTION_DIM), jnp.float32),
        grid=(B_pad // TB,),
        in_specs=[
            x_spec,
            const(w1b.shape), const(b1.shape),
            const(w2b.shape), const(b2.shape),
            const(w3b.shape), const(b3.shape),
            const(w4b.shape), const(b4p.shape),
        ],
        out_specs=out_spec,
        compiler_params=pltpu.CompilerParams(
            dimension_semantics=("parallel",)),
    )(x, w1b, b1, w2b, b2, w3b, b3, w4b, b4p)

    return out[:B]


def init_params(key):
    """PyTorch nn.Linear-style init: U(-1/sqrt(fan_in), 1/sqrt(fan_in)).

    Weights stored as (in_features, out_features) (transpose of torch), biases (1, out).
    """
    dims = [(STATE_DIM, HIDDEN), (HIDDEN, HIDDEN), (HIDDEN, HIDDEN), (HIDDEN, ACTION_DIM)]
    params = []
    keys = jax.random.split(key, 2 * len(dims))
    for i, (fan_in, fan_out) in enumerate(dims):
        bound = 1.0 / jnp.sqrt(jnp.float32(fan_in))
        w = jax.random.uniform(keys[2 * i], (fan_in, fan_out), jnp.float32,
                               minval=-bound, maxval=bound)
        b = jax.random.uniform(keys[2 * i + 1], (1, fan_out), jnp.float32,
                               minval=-bound, maxval=bound)
        params += [w, b]
    return tuple(params)


def reference_forward_f32(x, params):
    w1, b1, w2, b2, w3, b3, w4, b4 = params
    h = _lrelu(x @ w1 + b1)
    h = _lrelu(h @ w2 + b2)
    h = _lrelu(h @ w3 + b3)
    logits = h @ w4 + b4
    return jax.nn.softmax(logits, axis=-1)


def reference_forward_mixed(x, params):
    """Mirrors the kernel's bf16-in / f32-accumulate precision."""
    w1, b1, w2, b2, w3, b3, w4, b4 = params

    def mm(a, w):
        return jnp.dot(a.astype(jnp.bfloat16), w.astype(jnp.bfloat16),
                       preferred_element_type=jnp.float32)

    h = _lrelu(mm(x, w1) + b1)
    h = _lrelu(mm(h, w2) + b2)
    h = _lrelu(mm(h, w3) + b3)
    logits = mm(h, w4) + b4
    return jax.nn.softmax(logits, axis=-1)


# TODO(synk): sample_action / best_action / evaluete_action (Categorical sampling,
# log-prob, entropy) are host/driver-side logic in the original module; only the
# forward pass is implemented as a Pallas kernel.


if __name__ == "__main__":
    key = jax.random.PRNGKey(0)
    pkey, xkey = jax.random.split(key)
    params = init_params(pkey)
    prepared = prepare_params(params)   # one-time param prep (hoisted out of forward)

    B = 8
    x = jax.random.normal(xkey, (B, STATE_DIM), jnp.float32)

    y = policy_forward(x, prepared)
    y = jax.block_until_ready(y)

    y_mixed = reference_forward_mixed(x, params)
    y_f32 = reference_forward_f32(x, params)

    assert y.shape == (B, ACTION_DIM)
    assert jnp.allclose(jnp.sum(y, axis=-1), 1.0, atol=1e-3)
    assert jnp.allclose(y, y_mixed, atol=1e-2, rtol=1e-2)
    assert jnp.allclose(y, y_f32, atol=3e-2, rtol=3e-2)

    print("KERNEL_OK")
</pallas_src>

<mosaic_0001>
module attributes {stable_mosaic.version = 11 : i64} {
  func.func @policy_kernel(%arg0: i32, %arg1: memref<16x128xf32, #tpu.memory_space<vmem>>, %arg2: memref<128x128xbf16, #tpu.memory_space<vmem>>, %arg3: memref<1x128xf32, #tpu.memory_space<vmem>>, %arg4: memref<128x128xbf16, #tpu.memory_space<vmem>>, %arg5: memref<1x128xf32, #tpu.memory_space<vmem>>, %arg6: memref<128x128xbf16, #tpu.memory_space<vmem>>, %arg7: memref<1x128xf32, #tpu.memory_space<vmem>>, %arg8: memref<128x128xbf16, #tpu.memory_space<vmem>>, %arg9: memref<1x128xf32, #tpu.memory_space<vmem>>, %arg10: memref<16x4xf32, #tpu.memory_space<vmem>>) attributes {dimension_semantics = [#tpu.dimension_semantics<parallel>], iteration_bounds = array<i64: 1>, scalar_prefetch = 0 : i64, scratch_operands = 0 : i64, tpu.core_type = #tpu.core_type<tc>, window_params = [{transform_indices = @transform_0, window_bounds = array<i64: 16, 128>}, {pipeline_mode = #tpu.pipeline_mode<synchronous>, transform_indices = @transform_1, window_bounds = array<i64: 128, 128>}, {pipeline_mode = #tpu.pipeline_mode<synchronous>, transform_indices = @transform_2, window_bounds = array<i64: 1, 128>}, {pipeline_mode = #tpu.pipeline_mode<synchronous>, transform_indices = @transform_3, window_bounds = array<i64: 128, 128>}, {pipeline_mode = #tpu.pipeline_mode<synchronous>, transform_indices = @transform_4, window_bounds = array<i64: 1, 128>}, {pipeline_mode = #tpu.pipeline_mode<synchronous>, transform_indices = @transform_5, window_bounds = array<i64: 128, 128>}, {pipeline_mode = #tpu.pipeline_mode<synchronous>, transform_indices = @transform_6, window_bounds = array<i64: 1, 128>}, {pipeline_mode = #tpu.pipeline_mode<synchronous>, transform_indices = @transform_7, window_bounds = array<i64: 128, 128>}, {pipeline_mode = #tpu.pipeline_mode<synchronous>, transform_indices = @transform_8, window_bounds = array<i64: 1, 128>}, {transform_indices = @transform_9, window_bounds = array<i64: 16, 4>}]} {
    %c0 = arith.constant 0 : index
    %c0_0 = arith.constant 0 : index
    %0 = vector.load %arg1[%c0, %c0_0] : memref<16x128xf32, #tpu.memory_space<vmem>>, vector<16x128xf32>
    %1 = arith.truncf %0 : vector<16x128xf32> to vector<16x128xbf16>
    %c0_1 = arith.constant 0 : index
    %c0_2 = arith.constant 0 : index
    %2 = vector.load %arg2[%c0_1, %c0_2] : memref<128x128xbf16, #tpu.memory_space<vmem>>, vector<128x128xbf16>
    %cst = arith.constant dense<0.000000e+00> : vector<16x128xf32>
    %3 = tpu.matmul %1, %2, %cst {dimension_numbers = #tpu.dot_dimension_numbers<[1], [0], [0], [1], [0, 0, 1, 1], [], []>} : vector<16x128xbf16>, vector<128x128xbf16>, vector<16x128xf32> -> vector<16x128xf32>
    %c0_3 = arith.constant 0 : index
    %c0_4 = arith.constant 0 : index
    %4 = vector.load %arg3[%c0_3, %c0_4] : memref<1x128xf32, #tpu.memory_space<vmem>>, vector<1x128xf32>
    %5 = vector.broadcast %4 : vector<1x128xf32> to vector<16x128xf32>
    %6 = arith.addf %3, %5 : vector<16x128xf32>
    %cst_5 = arith.constant 0.000000e+00 : f32
    %7 = vector.broadcast %cst_5 : f32 to vector<16x128xf32>
    %8 = arith.cmpf ogt, %6, %7 : vector<16x128xf32>
    %cst_6 = arith.constant 1.000000e-01 : f32
    %9 = vector.broadcast %cst_6 : f32 to vector<16x128xf32>
    %10 = arith.mulf %9, %6 : vector<16x128xf32>
    %11 = arith.select %8, %6, %10 : vector<16x128xi1>, vector<16x128xf32>
    %12 = arith.truncf %11 : vector<16x128xf32> to vector<16x128xbf16>
    %c0_7 = arith.constant 0 : index
    %c0_8 = arith.constant 0 : index
    %13 = vector.load %arg4[%c0_7, %c0_8] : memref<128x128xbf16, #tpu.memory_space<vmem>>, vector<128x128xbf16>
    %cst_9 = arith.constant dense<0.000000e+00> : vector<16x128xf32>
    %14 = tpu.matmul %12, %13, %cst_9 {dimension_numbers = #tpu.dot_dimension_numbers<[1], [0], [0], [1], [0, 0, 1, 1], [], []>} : vector<16x128xbf16>, vector<128x128xbf16>, vector<16x128xf32> -> vector<16x128xf32>
    %c0_10 = arith.constant 0 : index
    %c0_11 = arith.constant 0 : index
    %15 = vector.load %arg5[%c0_10, %c0_11] : memref<1x128xf32, #tpu.memory_space<vmem>>, vector<1x128xf32>
    %16 = vector.broadcast %15 : vector<1x128xf32> to vector<16x128xf32>
    %17 = arith.addf %14, %16 : vector<16x128xf32>
    %cst_12 = arith.constant 0.000000e+00 : f32
    %18 = vector.broadcast %cst_12 : f32 to vector<16x128xf32>
    %19 = arith.cmpf ogt, %17, %18 : vector<16x128xf32>
    %cst_13 = arith.constant 1.000000e-01 : f32
    %20 = vector.broadcast %cst_13 : f32 to vector<16x128xf32>
    %21 = arith.mulf %20, %17 : vector<16x128xf32>
    %22 = arith.select %19, %17, %21 : vector<16x128xi1>, vector<16x128xf32>
    %23 = arith.truncf %22 : vector<16x128xf32> to vector<16x128xbf16>
    %c0_14 = arith.constant 0 : index
    %c0_15 = arith.constant 0 : index
    %24 = vector.load %arg6[%c0_14, %c0_15] : memref<128x128xbf16, #tpu.memory_space<vmem>>, vector<128x128xbf16>
    %cst_16 = arith.constant dense<0.000000e+00> : vector<16x128xf32>
    %25 = tpu.matmul %23, %24, %cst_16 {dimension_numbers = #tpu.dot_dimension_numbers<[1], [0], [0], [1], [0, 0, 1, 1], [], []>} : vector<16x128xbf16>, vector<128x128xbf16>, vector<16x128xf32> -> vector<16x128xf32>
    %c0_17 = arith.constant 0 : index
    %c0_18 = arith.constant 0 : index
    %26 = vector.load %arg7[%c0_17, %c0_18] : memref<1x128xf32, #tpu.memory_space<vmem>>, vector<1x128xf32>
    %27 = vector.broadcast %26 : vector<1x128xf32> to vector<16x128xf32>
    %28 = arith.addf %25, %27 : vector<16x128xf32>
    %cst_19 = arith.constant 0.000000e+00 : f32
    %29 = vector.broadcast %cst_19 : f32 to vector<16x128xf32>
    %30 = arith.cmpf ogt, %28, %29 : vector<16x128xf32>
    %cst_20 = arith.constant 1.000000e-01 : f32
    %31 = vector.broadcast %cst_20 : f32 to vector<16x128xf32>
    %32 = arith.mulf %31, %28 : vector<16x128xf32>
    %33 = arith.select %30, %28, %32 : vector<16x128xi1>, vector<16x128xf32>
    %34 = arith.truncf %33 : vector<16x128xf32> to vector<16x128xbf16>
    %c0_21 = arith.constant 0 : index
    %c0_22 = arith.constant 0 : index
    %35 = vector.load %arg8[%c0_21, %c0_22] : memref<128x128xbf16, #tpu.memory_space<vmem>>, vector<128x128xbf16>
    %cst_23 = arith.constant dense<0.000000e+00> : vector<16x128xf32>
    %36 = tpu.matmul %34, %35, %cst_23 {dimension_numbers = #tpu.dot_dimension_numbers<[1], [0], [0], [1], [0, 0, 1, 1], [], []>} : vector<16x128xbf16>, vector<128x128xbf16>, vector<16x128xf32> -> vector<16x128xf32>
    %c0_24 = arith.constant 0 : index
    %c0_25 = arith.constant 0 : index
    %37 = vector.load %arg9[%c0_24, %c0_25] : memref<1x128xf32, #tpu.memory_space<vmem>>, vector<1x128xf32>
    %38 = vector.broadcast %37 : vector<1x128xf32> to vector<16x128xf32>
    %39 = arith.addf %36, %38 : vector<16x128xf32>
    %cst_26 = arith.constant dense<0xFF800000> : vector<16xf32>
    %40 = vector.multi_reduction <maximumf>, %39, %cst_26 [1] : vector<16x128xf32> to vector<16xf32>
    %41 = vector.shape_cast %40 : vector<16xf32> to vector<16x1xf32>
    %42 = vector.broadcast %41 : vector<16x1xf32> to vector<16x128xf32>
    %43 = arith.subf %39, %42 : vector<16x128xf32>
    %44 = math.exp %43 : vector<16x128xf32>
    %cst_27 = arith.constant dense<0.000000e+00> : vector<16xf32>
    %45 = vector.multi_reduction <add>, %44, %cst_27 [1] : vector<16x128xf32> to vector<16xf32>
    %46 = vector.shape_cast %45 : vector<16xf32> to vector<16x1xf32>
    %47 = vector.broadcast %46 : vector<16x1xf32> to vector<16x128xf32>
    %48 = arith.divf %44, %47 : vector<16x128xf32>
    %49 = vector.extract_strided_slice %48 {offsets = [0, 0], sizes = [16, 4], strides = [1, 1]} : vector<16x128xf32> to vector<16x4xf32>
    %c0_28 = arith.constant 0 : index
    %c0_29 = arith.constant 0 : index
    %50 = vector.load %arg10[%c0_28, %c0_29] : memref<16x4xf32, #tpu.memory_space<vmem>>, vector<16x4xf32>
    tpu.vector_store %arg10[%c0_28, %c0_29], %49 {strides = array<i32>} : memref<16x4xf32, #tpu.memory_space<vmem>>, vector<16x4xf32>,
    return
  }
  func.func @transform_0(%arg0: i32) -> (i32, i32) {
    %c0_i32 = arith.constant 0 : i32
    %c0_i32_0 = arith.constant 0 : i32
    return %arg0, %c0_i32 : i32, i32
  }
  func.func @transform_1(%arg0: i32) -> (i32, i32) {
    %c0_i32 = arith.constant 0 : i32
    %c0_i32_0 = arith.constant 0 : i32
    %c0_i32_1 = arith.constant 0 : i32
    return %c0_i32, %c0_i32_0 : i32, i32
  }
  func.func @transform_2(%arg0: i32) -> (i32, i32) {
    %c0_i32 = arith.constant 0 : i32
    %c0_i32_0 = arith.constant 0 : i32
    %c0_i32_1 = arith.constant 0 : i32
    return %c0_i32, %c0_i32_0 : i32, i32
  }
  func.func @transform_3(%arg0: i32) -> (i32, i32) {
    %c0_i32 = arith.constant 0 : i32
    %c0_i32_0 = arith.constant 0 : i32
    %c0_i32_1 = arith.constant 0 : i32
    return %c0_i32, %c0_i32_0 : i32, i32
  }
  func.func @transform_4(%arg0: i32) -> (i32, i32) {
    %c0_i32 = arith.constant 0 : i32
    %c0_i32_0 = arith.constant 0 : i32
    %c0_i32_1 = arith.constant 0 : i32
    return %c0_i32, %c0_i32_0 : i32, i32
  }
  func.func @transform_5(%arg0: i32) -> (i32, i32) {
    %c0_i32 = arith.constant 0 : i32
    %c0_i32_0 = arith.constant 0 : i32
    %c0_i32_1 = arith.constant 0 : i32
    return %c0_i32, %c0_i32_0 : i32, i32
  }
  func.func @transform_6(%arg0: i32) -> (i32, i32) {
    %c0_i32 = arith.constant 0 : i32
    %c0_i32_0 = arith.constant 0 : i32
    %c0_i32_1 = arith.constant 0 : i32
    return %c0_i32, %c0_i32_0 : i32, i32
  }
  func.func @transform_7(%arg0: i32) -> (i32, i32) {
    %c0_i32 = arith.constant 0 : i32
    %c0_i32_0 = arith.constant 0 : i32
    %c0_i32_1 = arith.constant 0 : i32
    return %c0_i32, %c0_i32_0 : i32, i32
  }
  func.func @transform_8(%arg0: i32) -> (i32, i32) {
    %c0_i32 = arith.constant 0 : i32
    %c0_i32_0 = arith.constant 0 : i32
    %c0_i32_1 = arith.constant 0 : i32
    return %c0_i32, %c0_i32_0 : i32, i32
  }
  func.func @transform_9(%arg0: i32) -> (i32, i32) {
    %c0_i32 = arith.constant 0 : i32
    %c0_i32_0 = arith.constant 0 : i32
    return %arg0, %c0_i32 : i32, i32
  }
}

</mosaic_0001>

<bundles_post_ra>
// kernel: tpu_custom_call.1
= control target key start
LH: loop header
LB: loop body
LE: loop exit
PB: predicated region body
PF: predicated region fallthrough
CT: control target
= control target key end

     0   :  { %14 = vsyncpa [#allocation3], 0  ;;  %s1056_s0 = inlined_call_operand.hbm [shape: f32[16,128], index: 0, kind: input, shape index: {}]   ;;  %s1057_s1 = inlined_call_operand.hbm [shape: bf16[128,128], index: 1, kind: input, shape index: {}]   ;;  %s1058_s2 = inlined_call_operand.vmem [shape: f32[1,128], index: 2, kind: input, shape index: {}]   ;;  %s1059_s3 = inlined_call_operand.hbm [shape: bf16[128,128], index: 3, kind: input, shape index: {}]   ;;  %s1060_s4 = inlined_call_operand.vmem [shape: f32[1,128], index: 4, kind: input, shape index: {}]   ;;  %s1061_s5 = inlined_call_operand.hbm [shape: bf16[128,128], index: 5, kind: input, shape index: {}]   ;;  %s1062_s6 = inlined_call_operand.vmem [shape: f32[1,128], index: 6, kind: input, shape index: {}]   ;;  %s1063_s7 = inlined_call_operand.hbm [shape: bf16[128,128], index: 7, kind: input, shape index: {}]   ;;  %s1064_s8 = inlined_call_operand.vmem [shape: f32[1,128], index: 8, kind: input, shape index: {}]   ;;  %s1065_s9 = inlined_call_operand.vmem [shape: f32[16,4], index: 9, kind: output, shape index: {}]  }
   0x1   :  { %15 = vsyncpa [#allocation5], 0 }
   0x2   :  { %16 = vsyncpa [#allocation8], 0  ;;  %s910_s30 = smov [#allocation4]  }
   0x3   :  { %s34_s10 = sshll.u32 %s910_s30, 4  ;;  %s35_s10 = int_to_ptr.vmem [resolvable:$true] %s34_s10 }
   0x4   :  { %s812_s11 = scalar_lea.vmem %s35_s10, 1024  ;;  %p817_p1 = scmp.lt.s32.totalorder %s35_s10, %s35_s10 }
   0x5   :  { %p813_p0 = scmp.ne.s32.totalorder %s35_s10, %s812_s11  ;;  %p818_p2 = scmp.lt.s32.totalorder %s812_s11, %s812_s11 }
   0x7   :  { %p819_p3 = por %p818_p2, %p817_p1 }
   0x9   :  { %p820_p4 = pnand %p819_p3, %p813_p0 }
   0xb   :  { %823 = shalt.err (!%p820_p4)
}
   0xc   :  { %s911_s12 = smov 64   ;;  %s912_s13 = smov 4  }
   0xd   :  { %40 = dma.hbm_to_vmem [thread:$0]  %s1057_s1, 1024, %s35_s10, [#allocation5], %s911_s12, %s911_s12, %s912_s13  }
   0xe   :  { %s913_s16 = smov [#allocation7]   ;;  %s914_s18 = smov [#allocation2]  }
   0xf   :  { %s62_s17 = sshll.u32 %s913_s16, 4  ;;  %s22_s19 = sshll.u32 %s914_s18, 4  ;;  %s63_s17 = int_to_ptr.vmem [resolvable:$true] %s62_s17  ;;  %s23_s19 = int_to_ptr.vmem [resolvable:$true] %s22_s19 }
  0x10   :  { %s832_s20 = scalar_lea.vmem %s63_s17, 1024  ;;  %p837_p6 = scmp.lt.s32.totalorder %s63_s17, %s63_s17 }
  0x11   :  { %p833_p5 = scmp.ne.s32.totalorder %s63_s17, %s832_s20  ;;  %p838_p7 = scmp.lt.s32.totalorder %s832_s20, %s832_s20 }
  0x13   :  { %p839_p8 = por %p838_p7, %p837_p6 }
  0x15   :  { %p840_p9 = pnand %p839_p8, %p833_p5 }
  0x17   :  { %843 = shalt.err (!%p840_p9)
}
  0x18   :  { %68 = dma.hbm_to_vmem [thread:$0]  %s1061_s5, 1024, %s63_s17, [#allocation8], %s911_s12, %s911_s12, %s912_s13  }
  0x19   :  { %s852_s1 = scalar_lea.vmem %s23_s19, 256  ;;  %p857_p11 = scmp.lt.s32.totalorder %s23_s19, %s23_s19 }
  0x1a   :  { %p853_p10 = scmp.ne.s32.totalorder %s23_s19, %s852_s1  ;;  %p858_p12 = scmp.lt.s32.totalorder %s852_s1, %s852_s1 }
  0x1c   :  { %p859_p13 = por %p858_p12, %p857_p11 }
  0x1e   :  { %p860_p0 = pnand %p859_p13, %p853_p10 }
  0x20   :  { %863 = shalt.err (!%p860_p0)
}
  0x21   :  { %s915_s23 = smov 128   ;;  %s916_s24 = smov 8  }
  0x22   :  { %28 = dma.hbm_to_vmem [thread:$0]  %s1056_s0, 256, %s23_s19, [#allocation3], %s915_s23, %s915_s23, %s916_s24  }
  0x23   :  { %s917_s27 = smov [#allocation6]   ;;  %s918_s29 = smov [#allocation9]  }
  0x24   :  { %s48_s28 = sshll.u32 %s917_s27, 4  ;;  %s76_s30 = sshll.u32 %s918_s29, 4  ;;  %s49_s28 = int_to_ptr.vmem [resolvable:$true] %s48_s28  ;;  %s77_s30 = int_to_ptr.vmem [resolvable:$true] %s76_s30 }
  0x25   :  { %s872_s5 = scalar_lea.vmem %s49_s28, 1024  ;;  %p877_p2 = scmp.lt.s32.totalorder %s49_s28, %s49_s28 }
  0x26   :  { %p873_p1 = scmp.ne.s32.totalorder %s49_s28, %s872_s5  ;;  %p878_p3 = scmp.lt.s32.totalorder %s872_s5, %s872_s5 }
  0x28   :  { %p879_p4 = por %p878_p3, %p877_p2 }
  0x2a   :  { %p880_p5 = pnand %p879_p4, %p873_p1 }
  0x2c   :  { %883 = shalt.err (!%p880_p5)
}
  0x2d   :  { %54 = dma.hbm_to_vmem [thread:$0]  %s1059_s3, 1024, %s49_s28, [#allocation5], %s911_s12, %s911_s12, %s912_s13  }
  0x2e   :  { %s892_s0 = scalar_lea.vmem %s77_s30, 1024  ;;  %p897_p7 = scmp.lt.s32.totalorder %s77_s30, %s77_s30 }
  0x2f   :  { %p893_p6 = scmp.ne.s32.totalorder %s77_s30, %s892_s0  ;;  %p898_p8 = scmp.lt.s32.totalorder %s892_s0, %s892_s0 }
  0x31   :  { %p899_p9 = por %p898_p8, %p897_p7 }
  0x33   :  { %p900_p10 = pnand %p899_p9, %p893_p6 }
  0x35   :  { %903 = shalt.err (!%p900_p10)
}
  0x36   :  { %82 = dma.hbm_to_vmem [thread:$0]  %s1063_s7, 1024, %s77_s30, [#allocation8], %s911_s12, %s911_s12, %s912_s13  }
  0x37   :  { %904 = dma.done.wait [#allocation3], 256  }
  0x38   :  { %905 = vsyncadd [#allocation3], 4294967040 }
  0x39   :  { %906 = dma.done.wait [#allocation5], 2048  }
  0x3a   :  { %907 = vsyncadd [#allocation5], 4294965248 }
  0x3b   :  { %908 = dma.done.wait [#allocation8], 2048  }
  0x3c   :  { %909 = vsyncadd [#allocation8], 4294965248  ;;  %v919_v0 = vmov 0.0   ;;  %vm920_vm0 = vmmov 0   ;;  %v764_v1 = vld [vmem:[#allocation4 + $0x38] sm:$0xff]   ;;  %v765_v2 = vld [vmem:[#allocation4 + $0x30] sm:$0xff]  }
  0x3d   :  { %673 = vmatprep.subr.bf16.mxu0 %v919_v0  ;;  %689 = vmatprep.mubr.msk.bf16.mxu0 %vm920_vm0, %v919_v0  ;;  %v766_v3 = vld [vmem:[#allocation4 + $0x28] sm:$0xff]   ;;  %v772_v4 = vld [vmem:[#allocation6 + $0x38] sm:$0xff]   ;;  %v767_v5 = vld [vmem:[#allocation4 + $0x20] sm:$0xff]   ;;  %vm591_vm7 = vcmask 31744  }
  0x3e   :  { %693 = vmatprep.subr.bf16.mxu1 %v919_v0  ;;  %709 = vmatprep.mubr.msk.bf16.mxu1 %vm920_vm0, %v919_v0  ;;  %v773_v6 = vld [vmem:[#allocation6 + $0x30] sm:$0xff]   ;;  %v768_v7 = vld [vmem:[#allocation4 + $0x18] sm:$0xff]   ;;  %v774_v8 = vld [vmem:[#allocation6 + $0x28] sm:$0xff]  }
  0x3f   :  { %674 = vmatpush3.bf16.msra.mxu0 %v764_v1  ;;  %694 = vmatpush3.bf16.msra.mxu1 %v772_v4  ;;  %v769_v9 = vld [vmem:[#allocation4 + $0x10] sm:$0xff]   ;;  %v775_v10 = vld [vmem:[#allocation6 + $0x20] sm:$0xff]   ;;  %v770_v11 = vld [vmem:[#allocation4 + $0x8] sm:$0xff]  }
  0x40   :  { %675 = vmatprep.subr.bf16.mxu0 %v919_v0  ;;  %695 = vmatprep.subr.bf16.mxu1 %v919_v0  ;;  %v776_v12 = vld [vmem:[#allocation6 + $0x18] sm:$0xff]   ;;  %v771_v13 = vld [vmem:[#allocation4] sm:$0xff]   ;;  %v101_v14 = vld [vmem:[#allocation2] sm:$0xff] }
  0x41   :  { %v102_v15 = vld [vmem:[#allocation2 + $0x8] sm:$0xff]  ;;  %v777_v17 = vld [vmem:[#allocation6 + $0x10] sm:$0xff]   ;;  %v778_v18 = vld [vmem:[#allocation6 + $0x8] sm:$0xff]  }
  0x42   :  { %v103_v16 = vpack.c.bf16 %v102_v15, %v101_v14  ;;  %v779_v19 = vld [vmem:[#allocation6] sm:$0xff]   ;;  %v780_v20 = vld [vmem:[#allocation7 + $0x38] sm:$0xff]   ;;  %v781_v21 = vld [vmem:[#allocation7 + $0x30] sm:$0xff]  }
  0x43   :  { %676 = vmatpush3.bf16.msra.mxu0 %v765_v2  ;;  %696 = vmatpush3.bf16.msra.mxu1 %v773_v6  ;;  %v782_v22 = vld [vmem:[#allocation7 + $0x28] sm:$0xff]   ;;  %v783_v23 = vld [vmem:[#allocation7 + $0x20] sm:$0xff]   ;;  %v784_v24 = vld [vmem:[#allocation7 + $0x18] sm:$0xff]  }
  0x44   :  { %677 = vmatprep.subr.bf16.mxu0 %v919_v0  ;;  %697 = vmatprep.subr.bf16.mxu1 %v919_v0  ;;  %v601_v25 = vld [vmem:[%s1058_s2] ss:$0 sm:$0xff]  ;;  %v786_v38 = vld [vmem:[#allocation7 + $0x8] sm:$0xff]   ;;  %v787_v39 = vld [vmem:[#allocation7] sm:$0xff]  }
  0x45   :  { %v785_v37 = vld [vmem:[#allocation7 + $0x10] sm:$0xff]   ;;  %v788_v40 = vld [vmem:[#allocation9 + $0x38] sm:$0xff]   ;;  %v790_v42 = vld [vmem:[#allocation9 + $0x28] sm:$0xff]  }
  0x46   :  { %v789_v41 = vld [vmem:[#allocation9 + $0x30] sm:$0xff]   ;;  %v791_v43 = vld [vmem:[#allocation9 + $0x20] sm:$0xff]   ;;  %v792_v44 = vld [vmem:[#allocation9 + $0x18] sm:$0xff]  }
  0x47   :  { %678 = vmatpush3.bf16.msra.mxu0 %v766_v3  ;;  %698 = vmatpush3.bf16.msra.mxu1 %v774_v8  ;;  %v610_v45 = vld [vmem:[%s1060_s4] ss:$0 sm:$0xff]  ;;  %v794_v58 = vld [vmem:[#allocation9 + $0x8] sm:$0xff]   ;;  %v795_v59 = vld [vmem:[#allocation9] sm:$0xff]  }
  0x48   :  { %679 = vmatprep.subr.bf16.mxu0 %v919_v0  ;;  %699 = vmatprep.subr.bf16.mxu1 %v919_v0  ;;  %v793_v57 = vld [vmem:[#allocation9 + $0x10] sm:$0xff]  }
  0x49   :  { %v619_v60 = vld [vmem:[%s1062_s6] ss:$0 sm:$0xff] }
  0x4b   :  { %680 = vmatpush3.bf16.msra.mxu0 %v767_v5  ;;  %700 = vmatpush3.bf16.msra.mxu1 %v775_v10 }
  0x4c   :  { %681 = vmatprep.subr.bf16.mxu0 %v919_v0  ;;  %701 = vmatprep.subr.bf16.mxu1 %v919_v0 }
  0x4f   :  { %682 = vmatpush3.bf16.msra.mxu0 %v768_v7  ;;  %702 = vmatpush3.bf16.msra.mxu1 %v776_v12 }
  0x50   :  { %683 = vmatprep.subr.bf16.mxu0 %v919_v0  ;;  %703 = vmatprep.subr.bf16.mxu1 %v919_v0 }
  0x53   :  { %684 = vmatpush3.bf16.msra.mxu0 %v769_v9  ;;  %704 = vmatpush3.bf16.msra.mxu1 %v777_v17 }
  0x54   :  { %685 = vmatprep.subr.bf16.mxu0 %v919_v0  ;;  %705 = vmatprep.subr.bf16.mxu1 %v919_v0 }
  0x57   :  { %686 = vmatpush3.bf16.msra.mxu0 %v770_v11  ;;  %706 = vmatpush3.bf16.msra.mxu1 %v778_v18 }
  0x58   :  { %687 = vmatprep.subr.bf16.mxu0 %v919_v0  ;;  %707 = vmatprep.subr.bf16.mxu1 %v919_v0 }
  0x5b   :  { %688 = vmatpush3.bf16.msra.mxu0 %v771_v13  ;;  %708 = vmatpush3.bf16.msra.mxu1 %v779_v19 }
  0x5c   :  { %713 = vmatprep.subr.bf16.mxu0 %v919_v0  ;;  %733 = vmatprep.subr.bf16.mxu1 %v919_v0 }
  0x5e   :  { %690 = vmatmul.mubr.bf16.vlgmr.msra.gmra.mxu0 %v103_v16 }
  0x5f   :  { %729 = vmatprep.mubr.msk.bf16.mxu0 %vm920_vm0, %v919_v0  ;;  %714 = vmatpush3.bf16.msra.mxu0 %v780_v20 }
  0x60   :  { %715 = vmatprep.subr.bf16.mxu0 %v919_v0 }
  0x63   :  { %716 = vmatpush3.bf16.msra.mxu0 %v781_v21 }
  0x64   :  { %717 = vmatprep.subr.bf16.mxu0 %v919_v0 }
  0x67   :  { %718 = vmatpush3.bf16.msra.mxu0 %v782_v22 }
  0x68   :  { %719 = vmatprep.subr.bf16.mxu0 %v919_v0 }
  0x6b   :  { %720 = vmatpush3.bf16.msra.mxu0 %v783_v23 }
  0x6c   :  { %721 = vmatprep.subr.bf16.mxu0 %v919_v0 }
  0x6f   :  { %722 = vmatpush3.bf16.msra.mxu0 %v784_v24 }
  0x70   :  { %723 = vmatprep.subr.bf16.mxu0 %v919_v0 }
  0x73   :  { %724 = vmatpush3.bf16.msra.mxu0 %v785_v37 }
  0x74   :  { %725 = vmatprep.subr.bf16.mxu0 %v919_v0 }
  0x77   :  { %726 = vmatpush3.bf16.msra.mxu0 %v786_v38 }
  0x78   :  { %727 = vmatprep.subr.bf16.mxu0 %v919_v0 }
  0x7b   :  { %728 = vmatpush3.bf16.msra.mxu0 %v787_v39 }
 0x11e   :  { %v209_v26 = vpop.f32.mrf.mxu0 }
 0x11f   :  { %v210_v27 = vadd.f32 %v601_v25, %v209_v26 }
 0x120   :  { %v691_v28 = vpop.f32.mrf.mxu0 }
 0x121   :  { %v218_v30 = vmul.f32 0.1, %v210_v27  ;;  %vm216_vm1 = vcmp.gt.f32.partialorder %v210_v27, 0.0 }
 0x122   :  { %v212_v29 = vpop.f32.mrf.mxu0 }
 0x123   :  { %v213_v31 = vadd.f32 %v601_v25, %v212_v29  ;;  %v220_v34 = vsel %vm216_vm1, %v210_v27, %v218_v30 }
 0x124   :  { %v692_v32 = vpop.f32.mrf.mxu0 }
 0x125   :  { %vm217_vm2 = vcmp.gt.f32.partialorder %v213_v31, 0.0  ;;  %v219_v33 = vmul.f32 0.1, %v213_v31 }
 0x127   :  { %v221_v35 = vsel %vm217_vm2, %v213_v31, %v219_v33 }
 0x128   :  { %v222_v36 = vpack.c.bf16 %v221_v35, %v220_v34 }
 0x12a   :  { %710 = vmatmul.mubr.bf16.vlgmr.msra.gmra.mxu1 %v222_v36 }
 0x12b   :  { %749 = vmatprep.mubr.msk.bf16.mxu1 %vm920_vm0, %v919_v0  ;;  %734 = vmatpush3.bf16.msra.mxu1 %v788_v40 }
 0x12c   :  { %735 = vmatprep.subr.bf16.mxu1 %v919_v0 }
 0x12f   :  { %736 = vmatpush3.bf16.msra.mxu1 %v789_v41 }
 0x130   :  { %737 = vmatprep.subr.bf16.mxu1 %v919_v0 }
 0x133   :  { %738 = vmatpush3.bf16.msra.mxu1 %v790_v42 }
 0x134   :  { %739 = vmatprep.subr.bf16.mxu1 %v919_v0 }
 0x137   :  { %740 = vmatpush3.bf16.msra.mxu1 %v791_v43 }
 0x138   :  { %741 = vmatprep.subr.bf16.mxu1 %v919_v0 }
 0x13b   :  { %742 = vmatpush3.bf16.msra.mxu1 %v792_v44 }
 0x13c   :  { %743 = vmatprep.subr.bf16.mxu1 %v919_v0 }
 0x13f   :  { %744 = vmatpush3.bf16.msra.mxu1 %v793_v57 }
 0x140   :  { %745 = vmatprep.subr.bf16.mxu1 %v919_v0 }
 0x143   :  { %746 = vmatpush3.bf16.msra.mxu1 %v794_v58 }
 0x144   :  { %747 = vmatprep.subr.bf16.mxu1 %v919_v0  ;;  %v628_v0 = vld [vmem:[%s1064_s8] ss:$0 sm:$0xff] }
 0x147   :  { %748 = vmatpush3.bf16.msra.mxu1 %v795_v59 }
 0x1ea   :  { %v328_v46 = vpop.f32.mrf.mxu1 }
 0x1eb   :  { %v329_v47 = vadd.f32 %v610_v45, %v328_v46 }
 0x1ec   :  { %v711_v48 = vpop.f32.mrf.mxu1 }
 0x1ed   :  { %v337_v50 = vmul.f32 0.1, %v329_v47  ;;  %vm335_vm3 = vcmp.gt.f32.partialorder %v329_v47, 0.0 }
 0x1ee   :  { %v331_v49 = vpop.f32.mrf.mxu1 }
 0x1ef   :  { %v332_v51 = vadd.f32 %v610_v45, %v331_v49  ;;  %v339_v54 = vsel %vm335_vm3, %v329_v47, %v337_v50 }
 0x1f0   :  { %v712_v52 = vpop.f32.mrf.mxu1 }
 0x1f1   :  { %vm336_vm4 = vcmp.gt.f32.partialorder %v332_v51, 0.0  ;;  %v338_v53 = vmul.f32 0.1, %v332_v51 }
 0x1f3   :  { %v340_v55 = vsel %vm336_vm4, %v332_v51, %v338_v53 }
 0x1f4   :  { %v341_v56 = vpack.c.bf16 %v340_v55, %v339_v54 }
 0x1f6   :  { %730 = vmatmul.mubr.bf16.vlgmr.msra.gmra.mxu0 %v341_v56 }
 0x2b6   :  { %v447_v61 = vpop.f32.mrf.mxu0 }
 0x2b7   :  { %v448_v62 = vadd.f32 %v619_v60, %v447_v61 }
 0x2b8   :  { %v731_v63 = vpop.f32.mrf.mxu0 }
 0x2b9   :  { %v456_v2 = vmul.f32 0.1, %v448_v62  ;;  %vm454_vm5 = vcmp.gt.f32.partialorder %v448_v62, 0.0 }
 0x2ba   :  { %v450_v1 = vpop.f32.mrf.mxu0 }
 0x2bb   :  { %v451_v3 = vadd.f32 %v619_v60, %v450_v1  ;;  %v458_v6 = vsel %vm454_vm5, %v448_v62, %v456_v2 }
 0x2bc   :  { %v732_v4 = vpop.f32.mrf.mxu0 }
 0x2bd   :  { %vm455_vm6 = vcmp.gt.f32.partialorder %v451_v3, 0.0  ;;  %v457_v5 = vmul.f32 0.1, %v451_v3 }
 0x2bf   :  { %v459_v7 = vsel %vm455_vm6, %v451_v3, %v457_v5 }
 0x2c0   :  { %v460_v8 = vpack.c.bf16 %v459_v7, %v458_v6 }
 0x2c2   :  { %750 = vmatmul.mubr.bf16.vlgmr.msra.gmra.mxu1 %v460_v8 }
 0x382   :  { %v566_v9 = vpop.f32.mrf.mxu1 }
 0x383   :  { %v567_v10 = vadd.f32 %v628_v0, %v566_v9 }
 0x384   :  { %v751_v11 = vpop.f32.mrf.mxu1 }
 0x385   :  { %573 = vmax.xlane.f32.xlu0 %v567_v10 }
 0x386   :  { %v569_v12 = vpop.f32.mrf.mxu1 }
 0x387   :  { %v570_v13 = vadd.f32 %v628_v0, %v569_v12 }
 0x388   :  { %v752_v14 = vpop.f32.mrf.mxu1 }
 0x389   :  { %575 = vmax.xlane.f32.xlu0 %v570_v13 }
 0x40e   :  { %v574_v15 = vpop.xlane.xlu0 %573 }
 0x40f   :  { %v577_v16 = vsub.f32 %v567_v10, %v574_v15 }
 0x411   :  { %v579_v17 = vmul.f32 1.442695, %v577_v16 }
 0x412   :  { %v576_v18 = vpop.xlane.xlu0 %575 }
 0x413   :  { %796 = vpow2.f32 %v579_v17  ;;  %v578_v19 = vsub.f32 %v570_v13, %v576_v18 }
 0x415   :  { %v581_v20 = vmul.f32 1.442695, %v578_v19 }
 0x417   :  { %798 = vpow2.f32 %v581_v20 }
 0x420   :  { %v797_v21 = vpop.eup %796 }
 0x421   :  { %583 = vadd.xlane.f32.xlu1 %v797_v21 }
 0x424   :  { %v799_v22 = vpop.eup %798 }
 0x425   :  { %585 = vadd.xlane.f32.xlu1 %v799_v22 }
 0x4aa   :  { %v584_v23 = vpop.xlane.xlu1 %583 }
 0x4ab   :  { %800 = vrcp.f32 %v584_v23 }
 0x4ae   :  { %v586_v24 = vpop.xlane.xlu1 %585 }
 0x4af   :  { %802 = vrcp.f32 %v586_v24 }
 0x4b8   :  { %v801_v25 = vpop.eup %800 }
 0x4b9   :  { %v588_v26 = vmul.f32 %v801_v25, %v797_v21 }
 0x4bb   :  { %592 = vst.msk [vmem:[%s1065_s9] sm:$0xff] %vm591_vm7, %v588_v26 }
 0x4bc   :  { %v803_v27 = vpop.eup %802 }
 0x4bd   :  { %v590_v28 = vmul.f32 %v803_v27, %v799_v22 }
 0x4bf   :  { %593 = vst.msk [vmem:[%s1065_s9 + $0x8] sm:$0xff] %vm591_vm7, %v590_v28 }
 0x4c0   :  { %598 = vsyncpa [#allocation3], 1 }
 0x4c1   :  { %599 = vsyncpa [#allocation5], 1 }
 0x4c2   :  { %600 = vsyncpa [#allocation8], 1 }

</bundles_post_ra>
